<compile_context>
chip_gen: v7x
topology: tpu7x:2x2x1
jax: 0.10.0
libtpu: 0.0.40
codegen_flags: <defaults>
</compile_context>

<pallas_src>
import jax
import jax.numpy as jnp
from jax.experimental import pallas as pl
from jax.experimental.pallas import tpu as pltpu


def rope_kernel(inv_freq_ref, x_ref, out_ref):
    """Rotates one (B, TILE_S, D) block in the interleaved even/odd layout.

    inv_freq_ref : [1, D] f32, inv_freq repeated per pair (lanes 2i and 2i+1
                   both carry inv_freq[i])
    x_ref        : [B, TILE_S, D]  (caller dtype)
    out_ref      : [B, TILE_S, D]  (caller dtype)
    """
    _, ts, d = x_ref.shape
    s0 = pl.program_id(0) * ts

    # Lane parity mask (even lane 2i vs odd lane 2i+1).
    lane = jax.lax.broadcasted_iota(jnp.int32, (ts, d), 1)
    is_even = jnp.bitwise_and(lane, 1) == 0

    # Positions for this sequence tile (offset by the grid index).
    pos = (jax.lax.broadcasted_iota(jnp.int32, (ts, d), 0) + s0).astype(jnp.float32)
    theta = pos * inv_freq_ref[...]                       # [TILE_S, D]

    # Single EUP pass: even lanes evaluate sin(theta + pi/2) = cos(theta),
    # odd lanes evaluate sin(theta).
    phase = jnp.where(is_even, jnp.float32(jnp.pi / 2), jnp.float32(0.0))
    t = jnp.sin(theta + phase)                            # [TILE_S, D]
    t_prev = pltpu.roll(t, 1, 1)                          # lane l <- t[l-1]
    t_next = pltpu.roll(t, d - 1, 1)                      # lane l <- t[l+1]
    #   cos_f[2i] = cos_f[2i+1] = cos(theta_i)
    #   sin_signed[2i] = -sin(theta_i), sin_signed[2i+1] = +sin(theta_i)
    cos_f = jnp.where(is_even, t, t_prev)
    sin_signed = jnp.where(is_even, -t_next, t)

    # Partner element of each pair, computed in the SOURCE dtype (halves XLU
    # traffic for bf16 inputs):  partner[2i] = x[2i+1], partner[2i+1] = x[2i].
    x_src = x_ref[...]                                    # [B, TILE_S, D]
    nxt = pltpu.roll(x_src, d - 1, 2)                     # lane l <- x[l+1]
    prv = pltpu.roll(x_src, 1, 2)                         # lane l <- x[l-1]
    partner = jnp.where(is_even[None], nxt, prv)

    #   out[2i]   = x[2i]   * cos - x[2i+1] * sin
    #   out[2i+1] = x[2i+1] * cos + x[2i]   * sin
    out = (x_src.astype(jnp.float32) * cos_f[None]
           + partner.astype(jnp.float32) * sin_signed[None])
    out_ref[...] = out.astype(out_ref.dtype)


def _round_up(v, m):
    return (v + m - 1) // m * m


def _choose_tile_s(B, S, D, itemsize, *, target_bytes=4 << 20,
                   vmem_budget=40 << 20, min_grid=2):
    """Sequence-tile size: sublane-pack aligned, a divisor of S, VMEM-safe."""
    pack = 32 // itemsize            # native sublane packing: f32 8, bf16 16, int8 32
    if S <= pack or S % pack != 0:
        return S                     # single full-S block (full-dim block is always legal)

    row_hbm = B * D * itemsize
    # Per-sequence-row VMEM cost: double-buffered in+out blocks, a handful of
    # f32 full-block temporaries, and the f32 trig tables.
    row_vmem = 4 * row_hbm + 6 * B * D * 4 + 6 * D * 4

    max_rows = min(target_bytes // row_hbm, vmem_budget // row_vmem)
    # Keep at least `min_grid` grid steps so both v7x TensorCores get work.
    max_rows = min(max_rows, _round_up(pl.cdiv(S, min_grid), pack))
    max_rows = max(pack, min(max_rows, S))

    t = (max_rows // pack) * pack
    while t >= pack:                 # largest pack-aligned divisor of S
        if S % t == 0:
            return t
        t -= pack
    return S


def interleave_inv_freq(inv_freq, d_model):
    """[D//2] inv_freq -> [1, D] with lanes 2i and 2i+1 both = inv_freq[i].

    Callers doing RoPE every layer should compute this once and pass it in.
    """
    return jnp.repeat(inv_freq.astype(jnp.float32), 2).reshape(1, d_model)


def rope_forward(x, inv_freq, *, tile_s=None, inplace=False):
    """x: [B, S, D]; inv_freq: [D//2] or pre-interleaved [1, D] -> rotated x."""
    B, S, D = x.shape
    assert D % 2 == 0, "d_model must be even for RoPE"
    # Best performance when D is a multiple of 128 (lane-dense); for per-head
    # RoPE with small head dims, fold heads into the last axis before calling.

    if inv_freq.ndim == 1 and inv_freq.shape[0] == D // 2:
        inv_freq_full = interleave_inv_freq(inv_freq, D)
    else:
        inv_freq_full = jnp.asarray(inv_freq, jnp.float32).reshape(1, D)

    itemsize = jnp.dtype(x.dtype).itemsize
    if tile_s is None:
        tile_s = _choose_tile_s(B, S, D, itemsize)
    tile_s = min(tile_s, S)
    grid = (pl.cdiv(S, tile_s),)

    # Explicit VMEM budget: double-buffered in+out blocks + f32 temporaries.
    block_bytes = B * tile_s * D * itemsize
    f32_block = B * tile_s * D * 4
    table_bytes = tile_s * D * 4
    vmem_est = 4 * block_bytes + 6 * f32_block + 6 * table_bytes + (2 << 20)
    vmem_limit = int(min(max(vmem_est, 32 << 20), 64 << 20))

    kwargs = {}
    if inplace:
        # Reuse x's HBM buffer for the output (no extra allocation / copy when
        # the caller donates x).
        kwargs["input_output_aliases"] = {1: 0}

    return pl.pallas_call(
        rope_kernel,
        out_shape=jax.ShapeDtypeStruct((B, S, D), x.dtype),
        grid=grid,
        in_specs=[
            pl.BlockSpec((1, D), lambda i: (0, 0)),
            pl.BlockSpec((B, tile_s, D), lambda i: (0, i, 0)),
        ],
        out_specs=pl.BlockSpec((B, tile_s, D), lambda i: (0, i, 0)),
        compiler_params=pltpu.CompilerParams(
            dimension_semantics=("parallel",),
            vmem_limit_bytes=vmem_limit,
        ),
        **kwargs,
    )(inv_freq_full, x)


def rope_reference(x, inv_freq):
    """Pure-JAX reference matching the PyTorch forward (computed in f32)."""
    B, S, D = x.shape
    xf = x.astype(jnp.float32)
    position = jnp.arange(S, dtype=jnp.float32)
    freqs = jnp.outer(position, inv_freq.astype(jnp.float32))   # [S, D/2]
    cos_f = jnp.cos(freqs)[None]
    sin_f = jnp.sin(freqs)[None]
    x_even = xf[..., 0::2]
    x_odd = xf[..., 1::2]
    rot_even = x_even * cos_f - x_odd * sin_f
    rot_odd = x_even * sin_f + x_odd * cos_f
    out = jnp.zeros_like(xf)
    out = out.at[..., 0::2].set(rot_even)
    out = out.at[..., 1::2].set(rot_odd)
    return out


def _inv_freq(D):
    return 1.0 / (10000.0 ** (jnp.arange(0, D, 2, dtype=jnp.float32) / D))


if __name__ == "__main__":
    key = jax.random.PRNGKey(0)
    k1, k2, k3, k4 = jax.random.split(key, 4)

    # 1) Small module-like shape (single-block path).
    B, S, D = 2, 8, 32
    x1 = jax.random.normal(k1, (B, S, D), dtype=jnp.float32)
    inv1 = _inv_freq(D)
    out1 = jax.block_until_ready(rope_forward(x1, inv1))
    ref1 = rope_reference(x1, inv1)
    assert out1.shape == (B, S, D)
    assert jnp.allclose(out1, ref1, atol=1e-3, rtol=1e-3), "mismatch (case 1)"

    # 2) Lane-dense D=128, multi-tile grid, exercises per-tile position offset
    #    and the in-place (input_output_aliases) path.
    B2, S2, D2 = 2, 256, 128
    x2 = jax.random.normal(k2, (B2, S2, D2), dtype=jnp.float32)
    inv2 = _inv_freq(D2)
    ref2 = rope_reference(x2, inv2)                     # computed before aliasing
    out2 = jax.block_until_ready(rope_forward(x2, inv2, inplace=True))
    assert jnp.allclose(out2, ref2, atol=2e-3, rtol=2e-3), "mismatch (case 2)"

    # 3) bf16 HBM I/O, D=256 (cross-vreg lane roll), auto tile (grid >= 2).
    B3, S3, D3 = 2, 128, 256
    x3 = jax.random.normal(k3, (B3, S3, D3), dtype=jnp.float32).astype(jnp.bfloat16)
    inv3 = _inv_freq(D3)
    out3 = jax.block_until_ready(rope_forward(x3, inv3))
    ref3 = rope_reference(x3, inv3)
    assert jnp.allclose(out3.astype(jnp.float32), ref3, atol=5e-2, rtol=5e-2), \
        "mismatch (case 3, bf16)"

    # 4) f32, D=256, forced small tile to exercise several grid steps.
    B4, S4, D4 = 2, 64, 256
    x4 = jax.random.normal(k4, (B4, S4, D4), dtype=jnp.float32)
    inv4 = _inv_freq(D4)
    out4 = jax.block_until_ready(rope_forward(x4, inv4, tile_s=16))
    ref4 = rope_reference(x4, inv4)
    assert jnp.allclose(out4, ref4, atol=2e-3, rtol=2e-3), "mismatch (case 4)"

    print("KERNEL_OK")
</pallas_src>

<mosaic_0001>
module attributes {stable_mosaic.version = 11 : i64} {
  func.func @rope_kernel(%arg0: i32, %arg1: memref<1x32xf32, #tpu.memory_space<vmem>>, %arg2: memref<2x8x32xf32, #tpu.memory_space<vmem>>, %arg3: memref<2x8x32xf32, #tpu.memory_space<vmem>>) attributes {dimension_semantics = [#tpu.dimension_semantics<parallel>], iteration_bounds = array<i64: 1>, scalar_prefetch = 0 : i64, scratch_operands = 0 : i64, tpu.core_type = #tpu.core_type<tc>, window_params = [{pipeline_mode = #tpu.pipeline_mode<synchronous>, transform_indices = @transform_0, window_bounds = array<i64: 1, 32>}, {transform_indices = @transform_1, window_bounds = array<i64: 2, 8, 32>}, {transform_indices = @transform_2, window_bounds = array<i64: 2, 8, 32>}]} {
    %c8_i32 = arith.constant 8 : i32
    %0 = arith.muli %arg0, %c8_i32 : i32
    %1 = tpu.iota {dimensions = array<i32: 1>} : vector<8x32xi32>
    %c1_i32 = arith.constant 1 : i32
    %2 = vector.broadcast %c1_i32 : i32 to vector<8x32xi32>
    %3 = arith.andi %1, %2 : vector<8x32xi32>
    %c0_i32 = arith.constant 0 : i32
    %4 = vector.broadcast %c0_i32 : i32 to vector<8x32xi32>
    %5 = arith.cmpi eq, %3, %4 : vector<8x32xi32>
    %6 = tpu.iota {dimensions = array<i32: 0>} : vector<8x32xi32>
    %7 = vector.broadcast %0 : i32 to vector<8x32xi32>
    %8 = arith.addi %6, %7 : vector<8x32xi32>
    %9 = arith.sitofp %8 : vector<8x32xi32> to vector<8x32xf32>
    %c0 = arith.constant 0 : index
    %c0_0 = arith.constant 0 : index
    %10 = vector.load %arg1[%c0, %c0_0] : memref<1x32xf32, #tpu.memory_space<vmem>>, vector<1x32xf32>
    %11 = vector.broadcast %10 : vector<1x32xf32> to vector<8x32xf32>
    %12 = arith.mulf %9, %11 : vector<8x32xf32>
    %cst = arith.constant 1.57079637 : f32
    %cst_1 = arith.constant 0.000000e+00 : f32
    %13 = vector.broadcast %cst : f32 to vector<8x32xf32>
    %14 = vector.broadcast %cst_1 : f32 to vector<8x32xf32>
    %15 = arith.select %5, %13, %14 : vector<8x32xi1>, vector<8x32xf32>
    %16 = arith.addf %12, %15 : vector<8x32xf32>
    %17 = math.sin %16 : vector<8x32xf32>
    %c1_i32_2 = arith.constant 1 : i32
    %18 = tpu.dynamic_rotate %17 by %c1_i32_2 dim 1 : vector<8x32xf32>, i32 -> vector<8x32xf32>
    %c31_i32 = arith.constant 31 : i32
    %19 = tpu.dynamic_rotate %17 by %c31_i32 dim 1 : vector<8x32xf32>, i32 -> vector<8x32xf32>
    %20 = arith.select %5, %17, %18 : vector<8x32xi1>, vector<8x32xf32>
    %cst_3 = arith.constant 0.000000e+00 : f32
    %21 = vector.broadcast %cst_3 : f32 to vector<8x32xf32>
    %22 = arith.subf %21, %19 : vector<8x32xf32>
    %23 = arith.select %5, %22, %17 : vector<8x32xi1>, vector<8x32xf32>
    %c0_4 = arith.constant 0 : index
    %c0_5 = arith.constant 0 : index
    %c0_6 = arith.constant 0 : index
    %24 = vector.load %arg2[%c0_4, %c0_5, %c0_6] : memref<2x8x32xf32, #tpu.memory_space<vmem>>, vector<2x8x32xf32>
    %c31_i32_7 = arith.constant 31 : i32
    %25 = tpu.dynamic_rotate %24 by %c31_i32_7 dim 2 : vector<2x8x32xf32>, i32 -> vector<2x8x32xf32>
    %c1_i32_8 = arith.constant 1 : i32
    %26 = tpu.dynamic_rotate %24 by %c1_i32_8 dim 2 : vector<2x8x32xf32>, i32 -> vector<2x8x32xf32>
    %27 = vector.shape_cast %5 : vector<8x32xi1> to vector<1x8x32xi1>
    %28 = vector.shape_cast %27 : vector<1x8x32xi1> to vector<1x8x32xi1>
    %29 = vector.broadcast %28 : vector<1x8x32xi1> to vector<2x8x32xi1>
    %30 = arith.select %29, %25, %26 : vector<2x8x32xi1>, vector<2x8x32xf32>
    %31 = vector.shape_cast %20 : vector<8x32xf32> to vector<1x8x32xf32>
    %32 = vector.broadcast %31 : vector<1x8x32xf32> to vector<2x8x32xf32>
    %33 = arith.mulf %24, %32 : vector<2x8x32xf32>
    %34 = vector.shape_cast %23 : vector<8x32xf32> to vector<1x8x32xf32>
    %35 = vector.broadcast %34 : vector<1x8x32xf32> to vector<2x8x32xf32>
    %36 = arith.mulf %30, %35 : vector<2x8x32xf32>
    %37 = arith.addf %33, %36 : vector<2x8x32xf32>
    %c0_9 = arith.constant 0 : index
    %c0_10 = arith.constant 0 : index
    %c0_11 = arith.constant 0 : index
    %38 = vector.load %arg3[%c0_9, %c0_10, %c0_11] : memref<2x8x32xf32, #tpu.memory_space<vmem>>, vector<2x8x32xf32>
    tpu.vector_store %arg3[%c0_9, %c0_10, %c0_11], %37 {strides = array<i32>} : memref<2x8x32xf32, #tpu.memory_space<vmem>>, vector<2x8x32xf32>,
    return
  }
  func.func @transform_0(%arg0: i32) -> (i32, i32) {
    %c0_i32 = arith.constant 0 : i32
    %c0_i32_0 = arith.constant 0 : i32
    %c0_i32_1 = arith.constant 0 : i32
    return %c0_i32, %c0_i32_0 : i32, i32
  }
  func.func @transform_1(%arg0: i32) -> (i32, i32, i32) {
    %c0_i32 = arith.constant 0 : i32
    %c0_i32_0 = arith.constant 0 : i32
    %c0_i32_1 = arith.constant 0 : i32
    return %c0_i32, %arg0, %c0_i32_0 : i32, i32, i32
  }
  func.func @transform_2(%arg0: i32) -> (i32, i32, i32) {
    %c0_i32 = arith.constant 0 : i32
    %c0_i32_0 = arith.constant 0 : i32
    %c0_i32_1 = arith.constant 0 : i32
    return %c0_i32, %arg0, %c0_i32_0 : i32, i32, i32
  }
}

</mosaic_0001>

<bundles_post_ra>
// kernel: tpu_custom_call.1
= control target key start
LH: loop header
LB: loop body
LE: loop exit
PB: predicated region body
PF: predicated region fallthrough
CT: control target
= control target key end

     0   :  { %7 = vsyncpa [#allocation3], 0  ;;  %s465_s0 = inlined_call_operand.hbm [shape: f32[1,32], index: 0, kind: input, shape index: {}]   ;;  %s466_s1 = inlined_call_operand.hbm [shape: f32[2,8,32], index: 1, kind: input, shape index: {}]   ;;  %s467_s2 = inlined_call_operand.hbm [shape: f32[2,8,32], index: 2, kind: output, shape index: {}]  }
   0x1   :  { %8 = vsyncpa [#allocation6], 0 }
   0x2   :  { %9 = vsyncpa [#allocation4], 0  ;;  %s339_s9 = smov [#allocation2]   ;;  %s340_s11 = smov [#allocation5]  }
   0x3   :  { %s16_s10 = sshll.u32 %s339_s9, 4  ;;  %s25_s12 = sshll.u32 %s340_s11, 4  ;;  %s17_s10 = int_to_ptr.vmem [resolvable:$true] %s16_s10  ;;  %s369_s12 = int_to_ptr.vmem [resolvable:$true] %s25_s12 }
   0x4   :  { %s267_s15 = scalar_lea.hbm %s465_s0, 16 }
   0x5   :  { %p268_p0 = scmp.ne.s32.totalorder %s465_s0, %s267_s15  ;;  %p271_p1 = scmp.lt.u32.totalorder %s267_s15, %s465_s0 }
   0x7   :  { %p273_p2 = pnand %p271_p1, %p268_p0 }
   0x9   :  { %276 = shalt.err (!%p273_p2)
}
   0xa   :  { %s277_s20 = scalar_lea.vmem %s17_s10, 16  ;;  %s281_s21 = scalar_lea.vmem %s17_s10, 32 }
   0xb   :  { %p278_p3 = scmp.ne.s32.totalorder %s17_s10, %s277_s20  ;;  %p282_p4 = scmp.lt.s32.totalorder %s17_s10, %s17_s10 }
   0xc   :  { %p283_p5 = scmp.lt.s32.totalorder %s281_s21, %s277_s20 }
   0xe   :  { %p284_p6 = por %p283_p5, %p282_p4 }
  0x10   :  { %p285_p7 = pnand %p284_p6, %p278_p3 }
  0x12   :  { %288 = shalt.err (!%p285_p7)
}
  0x13   :  { %19 = dma.hbm_to_vmem [thread:$0]  %s465_s0, 16, %s17_s10, [#allocation3]  }
  0x14   :  { %s289_s26 = scalar_lea.hbm %s466_s1, 256 }
  0x15   :  { %p290_p8 = scmp.ne.s32.totalorder %s466_s1, %s289_s26  ;;  %p293_p9 = scmp.lt.u32.totalorder %s289_s26, %s466_s1 }
  0x17   :  { %p295_p10 = pnand %p293_p9, %p290_p8 }
  0x19   :  { %298 = shalt.err (!%p295_p10)
}
  0x1a   :  { %s299_s3 = scalar_lea.vmem %s369_s12, 256  ;;  %p304_p12 = scmp.lt.s32.totalorder %s369_s12, %s369_s12 }
  0x1b   :  { %p300_p11 = scmp.ne.s32.totalorder %s369_s12, %s299_s3  ;;  %p305_p13 = scmp.lt.s32.totalorder %s299_s3, %s299_s3 }
  0x1d   :  { %p306_p0 = por %p305_p13, %p304_p12 }
  0x1f   :  { %p307_p1 = pnand %p306_p0, %p300_p11 }
  0x21   :  { %310 = shalt.err (!%p307_p1)
}
  0x22   :  { %s341_s0 = smov 128   ;;  %s342_s4 = smov 8  }
  0x23   :  { %31 = dma.hbm_to_vmem [thread:$0]  %s466_s1, 256, %s369_s12, [#allocation6], %s341_s0, %s341_s0, %s342_s4  }
  0x24   :  { %333 = dma.done.wait [#allocation3], 16  }
  0x25   :  { %334 = vsyncadd [#allocation3], 4294967280 }
  0x26   :  { %335 = dma.done.wait [#allocation6], 256  }
  0x27   :  { %336 = vsyncadd [#allocation6], 4294967040  ;;  %v39_v0 = vlaneseq  ;;  %v239_v6 = vld [vmem:[#allocation2] ss:$0 sm:$0xff]  ;;  %v343_v7 = vmov 0.0   ;;  %v409_v9 = vld [vmem:[#allocation5 + $0x8] sm:$0xff] }
  0x28   :  { %s344_s1 = smov 32   ;;  %v345_v23 = vmov 683565275   ;;  %v346_v25 = vmov 2475754826   ;;  %vm162_vm14 = vcmask 1047808  }
  0x29   :  { %v40_v1 = vand.u32 127, %v39_v0  ;;  %v44_v2 = vshrl.u32 %v39_v0, 7  ;;  %185 = vrot.lane.b32.xlu1 %v409_v9, %s344_s1  ;;  %v347_v27 = vmov 2131351028   ;;  %v348_v29 = vmov 2102212464  }
  0x2a   :  { %v349_v31 = vmov 920167782   ;;  %v350_v38 = vmov 1326507024   ;;  %s351_s7 = smov 127   ;;  %s352_s8 = smov 97  }
  0x2b   :  { %v41_v3 = vand.u32 1, %v40_v1  ;;  %v47_v4 = vcvt.s32.f32 %v44_v2  ;;  %s353_s9 = smov [#allocation7]   ;;  %vm218_vm15 = vcmask 261120  }
  0x2c   :  { %s226_s10 = sshll.u32 %s353_s9, 4  ;;  %s227_s10 = int_to_ptr.vmem [resolvable:$true] %s226_s10 }
  0x2d   :  { %vm403_vm0 = vcmp.eq.s32.totalorder %v41_v3, 0  ;;  %v55_v10 = vmul.f32 %v239_v6, %v47_v4  ;;  %s311_s11 = scalar_lea.vmem %s227_s10, 256  ;;  %p316_p3 = scmp.lt.s32.totalorder %s227_s10, %s227_s10 }
  0x2e   :  { %v56_v8 = vsel %vm403_vm0, 1.5707964, %v343_v7  ;;  %p312_p2 = scmp.ne.s32.totalorder %s227_s10, %s311_s11  ;;  %p317_p4 = scmp.lt.s32.totalorder %s311_s11, %s311_s11 }
  0x2f   :  { %v413_v11 = vadd.f32 %v56_v8, %v55_v10 }
  0x30   :  { %p318_p5 = por %p317_p4, %p316_p3 }
  0x31   :  { %v61_v12 = vand.u32 2139095040, %v413_v11  ;;  %v58_v14 = vand.u32 2147483647, %v413_v11  ;;  %vm60_vm8 = vcmp.lt.s32.totalorder %v413_v11, 0  ;;  %vm150_vm13 = vweird.f32 %v413_v11 }
  0x32   :  { %p319_p6 = pnand %p318_p5, %p312_p2 }
  0x33   :  { %v62_v13 = vshrl.u32 %v61_v12, 23  ;;  %v65_v17 = vand.u32 8388607, %v58_v14  ;;  %vm59_vm9 = vcmp.le.f32.partialorder %v58_v14, 0.7853982 }
  0x35   :  { %v240_v15 = vadd.s32 4294967169, %v62_v13  ;;  %v66_v20 = vor.u32 8388608, %v65_v17 }
  0x37   :  { %v68_v16 = vadd.s32 1, %v240_v15  ;;  %v106_v40 = vshll.u32 %v66_v20, 8 }
  0x39   :  { %vm69_vm1 = vcmp.gt.s32.totalorder %v68_v16, 0 }
  0x3a   :  { %v70_v18 = vsel %vm69_vm1, %v68_v16, 0 }
  0x3b   :  { %v72_v19 = vand.u32 31, %v70_v18  ;;  %v71_v21 = vshrl.u32 %v70_v18, 5 }
  0x3d   :  { %v73_v22 = vsub.s32 32, %v72_v19  ;;  %v75_v24 = vshll.u32 %v345_v23, %v72_v19  ;;  %v78_v26 = vshll.u32 %v346_v25, %v72_v19  ;;  %v81_v28 = vshll.u32 %v347_v27, %v72_v19 }
  0x3e   :  { %v84_v30 = vshll.u32 %v348_v29, %v72_v19  ;;  %v87_v32 = vshll.u32 %v349_v31, %v72_v19  ;;  %vm90_vm2 = vcmp.lt.s32.totalorder %v71_v21, 1  ;;  %vm93_vm3 = vcmp.lt.s32.totalorder %v71_v21, 4 }
  0x3f   :  { %v74_v33 = vshrl.u32 %v345_v23, %v73_v22  ;;  %v76_v34 = vshrl.u32 %v346_v25, %v73_v22  ;;  %v79_v35 = vshrl.u32 %v347_v27, %v73_v22  ;;  %v82_v36 = vshrl.u32 %v348_v29, %v73_v22 }
  0x40   :  { %v85_v37 = vshrl.u32 %v349_v31, %v73_v22  ;;  %v88_v39 = vshrl.u32 %v350_v38, %v73_v22  ;;  %vm91_vm4 = vcmp.lt.s32.totalorder %v71_v21, 2  ;;  %vm92_vm5 = vcmp.lt.s32.totalorder %v71_v21, 3 }
  0x41   :  { %v77_v41 = vor.u32 %v76_v34, %v75_v24  ;;  %v80_v42 = vor.u32 %v79_v35, %v78_v26  ;;  %v83_v43 = vor.u32 %v82_v36, %v81_v28 }
  0x42   :  { %v86_v44 = vor.u32 %v85_v37, %v84_v30  ;;  %v89_v45 = vor.u32 %v88_v39, %v87_v32 }
  0x43   :  { %v94_v46 = vsel %vm90_vm2, %v74_v33, %v77_v41  ;;  %v95_v47 = vsel %vm93_vm3, %v83_v43, 2102212464  ;;  %v98_v48 = vsel %vm90_vm2, %v77_v41, %v80_v42  ;;  %v102_v49 = vsel %vm90_vm2, %v80_v42, %v83_v43 }
  0x44   :  { %v96_v50 = vsel %vm92_vm5, %v80_v42, %v95_v47  ;;  %v99_v51 = vsel %vm93_vm3, %v86_v44, 920167782  ;;  %v103_v52 = vsel %vm93_vm3, %v89_v45, 1326507024  ;;  %v180_v42 = vld [vmem:[#allocation5] sm:$0xff] }
  0x45   :  { %v100_v53 = vsel %vm92_vm5, %v83_v43, %v99_v51  ;;  %v104_v54 = vsel %vm92_vm5, %v86_v44, %v103_v52  ;;  %v97_v55 = vsel %vm91_vm4, %v94_v46, %v96_v50 }
  0x46   :  { %v101_v56 = vsel %vm91_vm4, %v98_v48, %v100_v53  ;;  %v105_v57 = vsel %vm91_vm4, %v102_v49, %v104_v54  ;;  %v113_v62 = vmul.u32 %v106_v40, %v97_v55 }
  0x47   :  { %v419_v58 = vmul.u32.u64.low %v106_v40, %v105_v57  ;;  %v420_v59 = vmul.u32.u64.high %v106_v40, %v105_v57, %v419_v58  ;;  %v422_v60 = vmul.u32.u64.low %v106_v40, %v101_v56  ;;  %v423_v61 = vmul.u32.u64.high %v106_v40, %v101_v56, %v422_v60 }
  0x49   :  { %vm115_vm6 = vc.u32 %v420_v59, %v422_v60  ;;  %v116_v63 = vadd.s32 1, %v423_v61  ;;  %v114_v13 = vadd.s32 %v422_v60, %v420_v59 }
  0x4b   :  { %v117_v0 = vsel %vm115_vm6, %v116_v63, %v423_v61 }
  0x4c   :  { %v118_v1 = vadd.s32 %v117_v0, %v113_v62 }
  0x4e   :  { %v119_v2 = vadd.s32 536870912, %v118_v1 }
  0x50   :  { %v120_v3 = vshrl.u32 %v119_v2, 30 }
  0x52   :  { %v121_v4 = vshll.u32 %v120_v3, 30  ;;  %v144_v26 = vsub.s32 4, %v120_v3 }
  0x54   :  { %v122_v6 = vsub.s32 %v118_v1, %v121_v4  ;;  %v145_v29 = vsel %vm60_vm8, %v144_v26, %v120_v3 }
  0x55   :  { %v147_v32 = vsel %vm59_vm9, 0, %v145_v29 }
  0x56   :  { %v124_v7 = vsub.s32 0, %v122_v6  ;;  %v151_v33 = vadd.s32 3, %v147_v32 }
  0x58   :  { %v241_v8 = vmin.u32 %v124_v7, %v122_v6  ;;  %v152_v34 = vand.u32 3, %v151_v33 }
  0x5a   :  { %v126_v10 = vclz %v241_v8  ;;  %vm157_vm10 = vcmp.eq.s32.totalorder %v152_v34, 2  ;;  %vm154_vm11 = vcmp.eq.s32.totalorder %v152_v34, 0  ;;  %vm153_vm12 = vcmp.lt.s32.totalorder %v152_v34, 2 }
  0x5c   :  { %v242_v12 = vadd.s32 4294967294, %v126_v10 }
  0x5e   :  { %vm243_vm7 = vcmp.lt.s32.totalorder %v242_v12, 0 }
  0x5f   :  { %v129_v15 = vsel %vm243_vm7, 0, %v242_v12 }
  0x60   :  { %v130_v16 = vsub.s32 32, %v129_v15  ;;  %v131_v17 = vshll.u32 %v122_v6, %v129_v15  ;;  %v134_v18 = vsub.s32 4294967266, %v129_v15 }
  0x62   :  { %v132_v19 = vshrl.u32 %v114_v13, %v130_v16  ;;  %v135_v20 = vadd.s32 127, %v134_v18 }
  0x64   :  { %v133_v21 = vor.u32 %v132_v19, %v131_v17  ;;  %v136_v22 = vshll.u32 %v135_v20, 23 }
  0x66   :  { %v137_v23 = vor.u32 4788187, %v136_v22  ;;  %v140_v24 = vcvt.s32.f32 %v133_v21 }
  0x68   :  { %v138_v25 = vand.u32 2147483647, %v137_v23 }
  0x6a   :  { %v141_v27 = vmul.f32 %v140_v24, %v138_v25 }
  0x6c   :  { %v142_v28 = vxor.u32 2147483648, %v141_v27 }
  0x6e   :  { %v143_v30 = vsel %vm60_vm8, %v142_v28, %v141_v27 }
  0x6f   :  { %v146_v31 = vsel %vm59_vm9, %v413_v11, %v143_v30 }
  0x70   :  { %263 = vcosq.f32 %v146_v31 }
  0x71   :  { %265 = vsinq.f32 %v146_v31 }
  0x7a   :  { %v264_v35 = vpop.eup %263 }
  0x7b   :  { %v266_v36 = vpop.eup %265  ;;  %v158_v37 = vxor.u32 2147483648, %v264_v35 }
  0x7c   :  { %v155_v38 = vxor.u32 2147483648, %v266_v36 }
  0x7d   :  { %v159_v14 = vsel %vm157_vm10, %v158_v37, %v266_v36 }
  0x7e   :  { %v156_v39 = vsel %vm154_vm11, %v264_v35, %v155_v38 }
  0x7f   :  { %v160_v40 = vsel %vm153_vm12, %v156_v39, %v159_v14 }
  0x80   :  { %v161_v41 = vsel %vm150_vm13, nan, %v160_v40 }
  0x81   :  { %163 = vrot.lane.b32.xlu0 %v161_v41, %s344_s1 }
  0x85   :  { %182 = vrot.lane.b32.xlu0 %v180_v42, %s344_s1 }
  0x9b   :  { %v186_v44 = vpop.permute.xlu1 %185 }
  0x9c   :  { %v187_v46 = vsel %vm162_vm14, %v186_v44, %v409_v9 }
  0xf3   :  { %v164_v43 = vpop.permute.xlu0 %163 }
  0xf4   :  { %v165_v45 = vsel %vm162_vm14, %v164_v43, %v161_v41 }
  0xf5   :  { %166 = vrot.lane.b32.xlu1 %v165_v45, %s344_s1 }
  0xf7   :  { %v183_v47 = vpop.permute.xlu0 %182 }
  0xf8   :  { %v184_v48 = vsel %vm162_vm14, %v183_v47, %v180_v42 }
  0xf9   :  { %190 = vrot.lane.b32.xlu1 %v187_v46, %s344_s1  ;;  %188 = vrot.lane.b32.xlu0 %v184_v48, %s344_s1 }
 0x167   :  { %v167_v11 = vpop.permute.xlu1 %166 }
 0x168   :  { %v168_v51 = vsel %vm162_vm14, %v167_v11, %v161_v41 }
 0x169   :  { %v174_v54 = vsub.f32 0.0, %v168_v51 }
 0x16b   :  { %v191_v49 = vpop.permute.xlu1 %190  ;;  %v189_v50 = vpop.permute.xlu0 %188 }
 0x16c   :  { %v193_v52 = vsel %vm162_vm14, %v191_v49, %v409_v9  ;;  %v192_v53 = vsel %vm162_vm14, %v189_v50, %v180_v42 }
 0x16d   :  { %200 = vrot.lane.b32.xlu1 %v193_v52, %s351_s7  ;;  %198 = vrot.lane.b32.xlu0 %v192_v53, %s351_s7 }
 0x171   :  { %176 = vrot.lane.b32.xlu1 %v174_v54, %s351_s7  ;;  %170 = vrot.lane.b32.xlu0 %v168_v51, %s352_s8 }
 0x175   :  { %206 = vrot.lane.b32.xlu1 %v193_v52, %s352_s8  ;;  %204 = vrot.lane.b32.xlu0 %v192_v53, %s352_s8 }
 0x1df   :  { %v201_v55 = vpop.permute.xlu1 %200  ;;  %v199_v56 = vpop.permute.xlu0 %198 }
 0x1e3   :  { %v177_v57 = vpop.permute.xlu1 %176  ;;  %v171_v58 = vpop.permute.xlu0 %170 }
 0x1e4   :  { %v173_v59 = vsel %vm403_vm0, %v161_v41, %v171_v58  ;;  %v179_v62 = vsel %vm403_vm0, %v177_v57, %v161_v41 }
 0x1e5   :  { %v212_v1 = vmul.f32 %v180_v42, %v173_v59  ;;  %v213_v2 = vmul.f32 %v409_v9, %v173_v59 }
 0x1e7   :  { %v207_v60 = vpop.permute.xlu1 %206  ;;  %v205_v61 = vpop.permute.xlu0 %204 }
 0x1e8   :  { %v211_v63 = vsel %vm403_vm0, %v201_v55, %v207_v60  ;;  %v210_v0 = vsel %vm403_vm0, %v199_v56, %v205_v61 }
 0x1e9   :  { %v215_v3 = vmul.f32 %v211_v63, %v179_v62  ;;  %v214_v4 = vmul.f32 %v210_v0, %v179_v62 }
 0x1eb   :  { %v217_v6 = vadd.f32 %v215_v3, %v213_v2  ;;  %v216_v7 = vadd.f32 %v214_v4, %v212_v1 }
 0x1ed   :  { %219 = vst.msk [vmem:[#allocation7] sm:$0xff] %vm218_vm15, %v216_v7  ;;  %220 = vst.msk [vmem:[#allocation7 + $0x8] sm:$0xff] %vm218_vm15, %v217_v6 }
 0x1ee   :  { %322 = shalt.err (!%p319_p6)
}
 0x1ef   :  { %s323_s14 = scalar_lea.hbm %s467_s2, 256 }
 0x1f0   :  { %p324_p7 = scmp.ne.s32.totalorder %s467_s2, %s323_s14  ;;  %p327_p8 = scmp.lt.u32.totalorder %s323_s14, %s467_s2 }
 0x1f2   :  { %p329_p9 = pnand %p327_p8, %p324_p7 }
 0x1f4   :  { %332 = shalt.err (!%p329_p9)
}
 0x1f5   :  { %232 = dma.vmem_to_hbm [thread:$0]  %s227_s10, 256, %s467_s2, [#allocation4], %s341_s0, %s341_s0, %s342_s4  }
 0x1f6   :  { %337 = dma.done.wait [#allocation4], 256  }
 0x1f7   :  { %338 = vsyncadd [#allocation4], 4294967040 }
 0x1f8   :  { %236 = vsyncpa [#allocation3], 1 }
 0x1f9   :  { %237 = vsyncpa [#allocation6], 1 }
 0x1fa   :  { %238 = vsyncpa [#allocation4], 1 }

</bundles_post_ra>
